<compile_context>
chip_gen: v6e
topology: v6e:2x2x1
jax: 0.10.0
libtpu: 0.0.40
codegen_flags: <defaults>
</compile_context>

<pallas_src>
import functools
import math

import jax
import jax.numpy as jnp
from jax.experimental import pallas as pl
from jax.experimental.pallas import tpu as pltpu


# ---------------------------------------------------------------------------
# helpers
# ---------------------------------------------------------------------------

def _sublane(dtype):
    """Sublane packing multiple for a dtype (8 f32, 16 bf16, 32 int8/fp8)."""
    return {4: 8, 2: 16, 1: 32}.get(jnp.dtype(dtype).itemsize, 8)


def _pick_edge_tile(dim, preferred, multiple):
    """Tile for a non-reduction (M / N) axis.  <= preferred and a multiple of
    `multiple`; the grid uses pl.cdiv so `dim` need not divide evenly (ragged
    tail rows/cols are masked on writeback)."""
    if dim <= preferred:
        return dim                       # full dim is always a legal block
    return max((preferred // multiple) * multiple, multiple)


def _pick_reduce_tile(dim, preferred, multiple=128):
    """Tile for the K (reduction) axis: must divide `dim` exactly (ragged K
    would accumulate garbage)."""
    if dim <= preferred:
        return dim
    t = (preferred // multiple) * multiple
    while t >= multiple:
        if dim % t == 0:
            return t
        t -= multiple
    # TODO(synk): pad K once at init for dims with no 128-aligned divisor.
    return dim


def _erf_approx(z):
    """Abramowitz & Stegun 7.1.26 erf approximation (max abs err ~1.5e-7).
    Uses only exp + arithmetic so it lowers cleanly in Mosaic."""
    a1, a2, a3, a4, a5 = (0.254829592, -0.284496736, 1.421413741,
                          -1.453152027, 1.061405429)
    p = 0.3275911
    s = jnp.where(z >= 0, 1.0, -1.0)
    za = jnp.abs(z)
    t = 1.0 / (1.0 + p * za)
    poly = ((((a5 * t + a4) * t + a3) * t + a2) * t + a1) * t
    return s * (1.0 - poly * jnp.exp(-(za * za)))


def _gelu_exact(x):
    """Exact GELU 0.5*x*(1+erf(x/sqrt(2))) — PyTorch nn.GELU() default."""
    return 0.5 * x * (1.0 + _erf_approx(x * (1.0 / math.sqrt(2.0))))


# ---------------------------------------------------------------------------
# Kernel 1: fused (LayerNorm ->) linear  y = x @ w + b  (+ gelu/relu) (+ res)
# ---------------------------------------------------------------------------

def _linear_kernel(*refs, activation, has_residual, has_ln, eps):
    idx = 0
    x_ref = refs[idx]; idx += 1
    w_ref = refs[idx]; idx += 1
    b_ref = refs[idx]; idx += 1
    if has_ln:
        g_ref = refs[idx]; idx += 1
        beta_ref = refs[idx]; idx += 1
    if has_residual:
        res_ref = refs[idx]; idx += 1
    o_ref = refs[idx]; idx += 1
    acc_ref = refs[idx]

    k = pl.program_id(2)

    @pl.when(k == 0)
    def _():
        acc_ref[...] = jnp.zeros_like(acc_ref)

    x = x_ref[...]
    if has_ln:
        # Fused LayerNorm prologue (only enabled when bk == nx, i.e. the x tile
        # spans the full normalization axis).
        xf = x.astype(jnp.float32)
        mean = jnp.mean(xf, axis=-1, keepdims=True)
        xc = xf - mean
        var = jnp.mean(xc * xc, axis=-1, keepdims=True)
        inv = jax.lax.rsqrt(var + eps)
        x = (xc * inv * g_ref[...].astype(jnp.float32)
             + beta_ref[...].astype(jnp.float32)).astype(x_ref.dtype)

    acc_ref[...] += jnp.dot(x, w_ref[...], preferred_element_type=jnp.float32)

    @pl.when(k == pl.num_programs(2) - 1)
    def _():
        out = acc_ref[...] + b_ref[...].astype(jnp.float32)
        if activation == "gelu":
            out = _gelu_exact(out)
        elif activation == "relu":
            out = jnp.maximum(out, 0.0)
        if has_residual:
            out = out + res_ref[...].astype(jnp.float32)
        o_ref[...] = out.astype(o_ref.dtype)


def linear(x, w, b=None, *, ln_weight=None, ln_bias=None, activation=None,
           residual=None, eps=1e-5, tm=256, tn=512, tk=512):
    """y = (LN(x) if ln_weight else x) @ w + b over the last dim of x.
    Weight convention (nx, nf) = transpose of nn.Linear.weight (GPT-2 Conv1D).
    On 128 MiB-VMEM parts (v5e/v6e) tm/tn can be bumped to 512/1024 with a
    ~96 MiB vmem limit; defaults stay v7x-safe (64 MiB/TC)."""
    nx, nf = w.shape
    lead = x.shape[:-1]
    x2 = x.reshape(-1, nx)
    m = x2.shape[0]
    if b is None:
        b = jnp.zeros((nf,), x.dtype)

    bk = _pick_reduce_tile(nx, tk)
    has_ln = ln_weight is not None
    if has_ln and bk != nx:
        # LN needs the whole row in one K tile; fall back to a standalone pass.
        x2 = layer_norm(x2, ln_weight, ln_bias, eps=eps)
        has_ln = False

    bm = _pick_edge_tile(m, tm, _sublane(x.dtype))
    bn = _pick_edge_tile(nf, tn, 128)
    gm, gn, gk = pl.cdiv(m, bm), pl.cdiv(nf, bn), nx // bk

    inputs = [x2, w, b.reshape(1, nf)]
    in_specs = [
        pl.BlockSpec((bm, bk), lambda i, j, k: (i, k)),   # x tile
        pl.BlockSpec((bk, bn), lambda i, j, k: (k, j)),   # weight tile
        pl.BlockSpec((1, bn), lambda i, j, k: (0, j)),    # bias row
    ]
    if has_ln:
        if ln_bias is None:
            ln_bias = jnp.zeros_like(ln_weight)
        inputs += [ln_weight.reshape(1, nx), ln_bias.reshape(1, nx)]
        in_specs += [pl.BlockSpec((1, nx), lambda i, j, k: (0, 0)),
                     pl.BlockSpec((1, nx), lambda i, j, k: (0, 0))]
    has_res = residual is not None
    if has_res:
        inputs.append(residual.reshape(-1, nf))
        in_specs.append(pl.BlockSpec((bm, bn), lambda i, j, k: (i, j)))

    itemsize = jnp.dtype(x.dtype).itemsize
    bytes_accessed = itemsize * (m * nx + nx * nf + m * nf + nf
                                 + (m * nf if has_res else 0)
                                 + (2 * nx if has_ln else 0))

    out = pl.pallas_call(
        functools.partial(_linear_kernel, activation=activation,
                          has_residual=has_res, has_ln=has_ln, eps=eps),
        out_shape=jax.ShapeDtypeStruct((m, nf), x.dtype),
        grid_spec=pltpu.PrefetchScalarGridSpec(
            num_scalar_prefetch=0,
            grid=(gm, gn, gk),
            in_specs=in_specs,
            out_specs=pl.BlockSpec((bm, bn), lambda i, j, k: (i, j)),
            scratch_shapes=[pltpu.VMEM((bm, bn), jnp.float32)],
        ),
        compiler_params=pltpu.CompilerParams(
            dimension_semantics=("parallel", "parallel", "arbitrary"),
            vmem_limit_bytes=48 * 1024 * 1024,
        ),
        cost_estimate=pl.CostEstimate(
            flops=2 * m * nx * nf,
            transcendentals=(m * nf if activation == "gelu" else 0),
            bytes_accessed=int(bytes_accessed),
        ),
    )(*inputs)
    return out.reshape(lead + (nf,))


# ---------------------------------------------------------------------------
# Kernel 2: standalone LayerNorm (fallback only; normally fused into linear)
# ---------------------------------------------------------------------------

def _layernorm_kernel(x_ref, w_ref, b_ref, o_ref, *, eps):
    x = x_ref[...].astype(jnp.float32)
    mean = jnp.mean(x, axis=-1, keepdims=True)
    xc = x - mean
    var = jnp.mean(xc * xc, axis=-1, keepdims=True)
    inv = jax.lax.rsqrt(var + eps)
    y = xc * inv * w_ref[...].astype(jnp.float32) + b_ref[...].astype(jnp.float32)
    o_ref[...] = y.astype(o_ref.dtype)


def layer_norm(x, weight, bias=None, *, eps=1e-5, tm=256):
    c = x.shape[-1]
    lead = x.shape[:-1]
    x2 = x.reshape(-1, c)
    m = x2.shape[0]
    bm = _pick_edge_tile(m, tm, _sublane(x.dtype))
    gm = pl.cdiv(m, bm)
    if bias is None:
        bias = jnp.zeros((c,), weight.dtype)
    out = pl.pallas_call(
        functools.partial(_layernorm_kernel, eps=eps),
        out_shape=jax.ShapeDtypeStruct((m, c), x.dtype),
        grid_spec=pltpu.PrefetchScalarGridSpec(
            num_scalar_prefetch=0,
            grid=(gm,),
            in_specs=[
                pl.BlockSpec((bm, c), lambda i: (i, 0)),
                pl.BlockSpec((1, c), lambda i: (0, 0)),
                pl.BlockSpec((1, c), lambda i: (0, 0)),
            ],
            out_specs=pl.BlockSpec((bm, c), lambda i: (i, 0)),
        ),
        compiler_params=pltpu.CompilerParams(dimension_semantics=("parallel",)),
    )(x2, weight.reshape(1, c), bias.reshape(1, c))
    return out.reshape(lead + (c,))


# ---------------------------------------------------------------------------
# Kernel 3: causal self-attention with fused head split/merge
#   input : qkv (B, T, 3C)  (c_attn output, channel layout [q | k | v],
#           each of q/k/v head-major: channel h*D+d of q is head h, dim d)
#   output: y   (B, T, C)   already in the merged "transpose(1,2).view(b,t,c)"
#           layout, ready for c_proj — no XLA transposes needed.
# ---------------------------------------------------------------------------

def _attn_kernel(qkv_ref, o_ref, *, n_head, head_dim, scale):
    t = qkv_ref.shape[1]
    c = n_head * head_dim
    qkv = qkv_ref[0]                                   # (T, 3C), input dtype

    row = jax.lax.broadcasted_iota(jnp.int32, (t, t), 0)
    col = jax.lax.broadcasted_iota(jnp.int32, (t, t), 1)
    causal = col <= row

    outs = []
    for h in range(n_head):                            # static unroll over heads
        lo = h * head_dim
        qh = qkv[:, lo:lo + head_dim]
        kh = qkv[:, c + lo:c + lo + head_dim]
        vh = qkv[:, 2 * c + lo:2 * c + lo + head_dim]

        # scores = q @ k^T * scale (MXU operands kept in input dtype, f32 acc)
        s = jax.lax.dot_general(qh, kh, (((1,), (1,)), ((), ())),
                                preferred_element_type=jnp.float32) * scale
        s = jnp.where(causal, s, -1e30)                # causal mask
        m = jnp.max(s, axis=-1, keepdims=True)
        p = jnp.exp(s - m)                             # f32 softmax numerator
        o = jnp.dot(p.astype(vh.dtype), vh,
                    preferred_element_type=jnp.float32)
        inv = pl.reciprocal(jnp.sum(p, axis=-1, keepdims=True), approx=True)
        outs.append(o * inv)

    o_all = outs[0] if n_head == 1 else jnp.concatenate(outs, axis=-1)
    o_ref[0] = o_all.astype(o_ref.dtype)               # single lane-dense store


def causal_attention(qkv, *, n_head):
    """qkv: (B, T, 3C) from c_attn.  Returns y: (B, T, C) merged-head layout."""
    # TODO(synk): for long sequences this should become a flash-style KV-tiled
    # kernel; full (T, T) scores per head are fine for the small block_size.
    b, t, c3 = qkv.shape
    c = c3 // 3
    d = c // n_head
    scale = 1.0 / math.sqrt(d)
    itemsize = jnp.dtype(qkv.dtype).itemsize
    return pl.pallas_call(
        functools.partial(_attn_kernel, n_head=n_head, head_dim=d, scale=scale),
        out_shape=jax.ShapeDtypeStruct((b, t, c), qkv.dtype),
        grid_spec=pltpu.PrefetchScalarGridSpec(
            num_scalar_prefetch=0,
            grid=(b,),
            in_specs=[pl.BlockSpec((1, t, c3), lambda i: (i, 0, 0))],
            out_specs=pl.BlockSpec((1, t, c), lambda i: (i, 0, 0)),
        ),
        compiler_params=pltpu.CompilerParams(
            dimension_semantics=("parallel",),
        ),
        cost_estimate=pl.CostEstimate(
            flops=4 * b * n_head * t * t * d,
            transcendentals=b * n_head * t * t,
            bytes_accessed=int(itemsize * (b * t * c3 + b * t * c)),
        ),
    )(qkv)


# ---------------------------------------------------------------------------
# Block forward (dropout=0.0 -> identity, so dropouts are omitted)
# ---------------------------------------------------------------------------

def gpt_block(x, params, *, n_head):
    b, t, c = x.shape
    assert c % n_head == 0

    # x = x + c_proj(attn(c_attn(ln_1(x))))      (LN1 fused into c_attn matmul)
    qkv = linear(x, params["attn_w"], params["attn_b"],
                 ln_weight=params["ln1_w"], ln_bias=params["ln1_b"])  # (B,T,3C)
    y = causal_attention(qkv, n_head=n_head)                          # (B,T,C)
    x = linear(y, params["attn_proj_w"], params["attn_proj_b"], residual=x)

    # x = x + c_proj(gelu(c_fc(ln_2(x))))        (LN2 fused into c_fc matmul)
    h = linear(x, params["fc_w"], params["fc_b"],
               ln_weight=params["ln2_w"], ln_bias=params["ln2_b"],
               activation="gelu")
    x = linear(h, params["proj_w"], params["proj_b"], residual=x)
    return x


# ---------------------------------------------------------------------------
# pure-JAX reference (PyTorch semantics: eps=1e-5, exact erf GELU)
# ---------------------------------------------------------------------------

def gpt_block_ref(x, p, *, n_head):
    def ln(u, w, bb):
        mu = jnp.mean(u, -1, keepdims=True)
        var = jnp.mean((u - mu) ** 2, -1, keepdims=True)
        return (u - mu) / jnp.sqrt(var + 1e-5) * w + bb

    def lin(u, w, bb):
        return u @ w + bb

    b, t, c = x.shape
    d = c // n_head
    h = ln(x, p["ln1_w"], p["ln1_b"])
    qkv = lin(h, p["attn_w"], p["attn_b"])
    q, k, v = jnp.split(qkv, 3, axis=-1)
    q = q.reshape(b, t, n_head, d).transpose(0, 2, 1, 3)
    k = k.reshape(b, t, n_head, d).transpose(0, 2, 1, 3)
    v = v.reshape(b, t, n_head, d).transpose(0, 2, 1, 3)
    s = jnp.einsum("bhqd,bhkd->bhqk", q, k) / math.sqrt(d)
    mask = jnp.tril(jnp.ones((t, t), bool))
    s = jnp.where(mask, s, -jnp.inf)
    a = jax.nn.softmax(s, axis=-1)
    y = jnp.einsum("bhqk,bhkd->bhqd", a, v)
    y = y.transpose(0, 2, 1, 3).reshape(b, t, c)
    x = x + lin(y, p["attn_proj_w"], p["attn_proj_b"])
    h = ln(x, p["ln2_w"], p["ln2_b"])
    h = jax.nn.gelu(lin(h, p["fc_w"], p["fc_b"]), approximate=False)  # exact erf
    x = x + lin(h, p["proj_w"], p["proj_b"])
    return x


# ---------------------------------------------------------------------------
# main
# ---------------------------------------------------------------------------

if __name__ == "__main__":
    # Small config: n_embd=32, n_head=4, block_size(seq)=8, batch=2,
    # bias=True, dropout=0.0, feedforward='fc', activation='gelu'.
    batch, seq, n_embd, n_head = 2, 8, 32, 4
    dtype = jnp.float32

    key = jax.random.PRNGKey(0)
    keys = jax.random.split(key, 12)

    x = jax.random.normal(keys[0], (batch, seq, n_embd), dtype=dtype)
    params = {
        "ln1_w": 1.0 + 0.1 * jax.random.normal(keys[1], (n_embd,), dtype),
        "ln1_b": 0.1 * jax.random.normal(keys[2], (n_embd,), dtype),
        # weights stored channels-last (in, out) == transpose of nn.Linear.weight
        "attn_w": 0.02 * jax.random.normal(keys[3], (n_embd, 3 * n_embd), dtype),
        "attn_b": 0.01 * jax.random.normal(keys[4], (3 * n_embd,), dtype),
        "attn_proj_w": 0.02 * jax.random.normal(keys[5], (n_embd, n_embd), dtype),
        "attn_proj_b": 0.01 * jax.random.normal(keys[6], (n_embd,), dtype),
        "ln2_w": 1.0 + 0.1 * jax.random.normal(keys[7], (n_embd,), dtype),
        "ln2_b": 0.1 * jax.random.normal(keys[8], (n_embd,), dtype),
        "fc_w": 0.02 * jax.random.normal(keys[9], (n_embd, 4 * n_embd), dtype),
        "fc_b": 0.01 * jax.random.normal(keys[10], (4 * n_embd,), dtype),
        "proj_w": 0.02 * jax.random.normal(keys[11], (4 * n_embd, n_embd), dtype),
        "proj_b": jnp.zeros((n_embd,), dtype),
    }

    y = gpt_block(x, params, n_head=n_head)
    y = jax.block_until_ready(y)

    y_ref = gpt_block_ref(x, params, n_head=n_head)
    assert y.shape == (batch, seq, n_embd)
    assert bool(jnp.all(jnp.isfinite(y)))
    assert jnp.allclose(y, y_ref, atol=5e-4, rtol=5e-4), (
        float(jnp.max(jnp.abs(y - y_ref))))

    print("KERNEL_OK")
</pallas_src>

<mosaic_0001>
module attributes {stable_mosaic.version = 11 : i64} {
  func.func @_linear_kernel(%arg0: i32, %arg1: i32, %arg2: i32, %arg3: memref<16x32xf32, #tpu.memory_space<vmem>>, %arg4: memref<32x96xf32, #tpu.memory_space<vmem>>, %arg5: memref<1x96xf32, #tpu.memory_space<vmem>>, %arg6: memref<1x32xf32, #tpu.memory_space<vmem>>, %arg7: memref<1x32xf32, #tpu.memory_space<vmem>>, %arg8: memref<16x96xf32, #tpu.memory_space<vmem>>, %arg9: memref<16x96xf32, #tpu.memory_space<vmem>>) attributes {dimension_semantics = [#tpu.dimension_semantics<parallel>, #tpu.dimension_semantics<parallel>, #tpu.dimension_semantics<arbitrary>], iteration_bounds = array<i64: 1, 1, 1>, scalar_prefetch = 0 : i64, scratch_operands = 1 : i64, tpu.core_type = #tpu.core_type<tc>, window_params = [{transform_indices = @transform_0, window_bounds = array<i64: 16, 32>}, {transform_indices = @transform_1, window_bounds = array<i64: 32, 96>}, {transform_indices = @transform_2, window_bounds = array<i64: 1, 96>}, {pipeline_mode = #tpu.pipeline_mode<synchronous>, transform_indices = @transform_3, window_bounds = array<i64: 1, 32>}, {pipeline_mode = #tpu.pipeline_mode<synchronous>, transform_indices = @transform_4, window_bounds = array<i64: 1, 32>}, {transform_indices = @transform_5, window_bounds = array<i64: 16, 96>}]} {
    %c0_i32 = arith.constant 0 : i32
    %0 = arith.cmpi eq, %arg2, %c0_i32 : i32
    %1 = arith.extui %0 : i1 to i32
    %c0_i32_0 = arith.constant 0 : i32
    %2 = arith.cmpi ne, %1, %c0_i32_0 : i32
    scf.if %2 {
      %cst_19 = arith.constant 0.000000e+00 : f32
      %34 = vector.broadcast %cst_19 : f32 to vector<16x96xf32>
      %c0_20 = arith.constant 0 : index
      %c0_21 = arith.constant 0 : index
      %35 = vector.load %arg9[%c0_20, %c0_21] : memref<16x96xf32, #tpu.memory_space<vmem>>, vector<16x96xf32>
      tpu.vector_store %arg9[%c0_20, %c0_21], %34 {strides = array<i32>} : memref<16x96xf32, #tpu.memory_space<vmem>>, vector<16x96xf32>,
    } else {
    }
    %c0 = arith.constant 0 : index
    %c0_1 = arith.constant 0 : index
    %3 = vector.load %arg3[%c0, %c0_1] : memref<16x32xf32, #tpu.memory_space<vmem>>, vector<16x32xf32>
    %cst = arith.constant dense<0.000000e+00> : vector<16xf32>
    %4 = vector.multi_reduction <add>, %3, %cst [1] : vector<16x32xf32> to vector<16xf32>
    %5 = vector.shape_cast %4 : vector<16xf32> to vector<16x1xf32>
    %cst_2 = arith.constant 3.200000e+01 : f32
    %6 = vector.broadcast %cst_2 : f32 to vector<16x1xf32>
    %7 = arith.divf %5, %6 : vector<16x1xf32>
    %8 = vector.broadcast %7 : vector<16x1xf32> to vector<16x32xf32>
    %9 = arith.subf %3, %8 : vector<16x32xf32>
    %10 = arith.mulf %9, %9 : vector<16x32xf32>
    %cst_3 = arith.constant dense<0.000000e+00> : vector<16xf32>
    %11 = vector.multi_reduction <add>, %10, %cst_3 [1] : vector<16x32xf32> to vector<16xf32>
    %12 = vector.shape_cast %11 : vector<16xf32> to vector<16x1xf32>
    %cst_4 = arith.constant 3.200000e+01 : f32
    %13 = vector.broadcast %cst_4 : f32 to vector<16x1xf32>
    %14 = arith.divf %12, %13 : vector<16x1xf32>
    %cst_5 = arith.constant 9.99999974E-6 : f32
    %15 = vector.broadcast %cst_5 : f32 to vector<16x1xf32>
    %16 = arith.addf %14, %15 : vector<16x1xf32>
    %17 = math.rsqrt %16 : vector<16x1xf32>
    %18 = vector.broadcast %17 : vector<16x1xf32> to vector<16x32xf32>
    %19 = arith.mulf %9, %18 : vector<16x32xf32>
    %c0_6 = arith.constant 0 : index
    %c0_7 = arith.constant 0 : index
    %20 = vector.load %arg6[%c0_6, %c0_7] : memref<1x32xf32, #tpu.memory_space<vmem>>, vector<1x32xf32>
    %21 = vector.broadcast %20 : vector<1x32xf32> to vector<16x32xf32>
    %22 = arith.mulf %19, %21 : vector<16x32xf32>
    %c0_8 = arith.constant 0 : index
    %c0_9 = arith.constant 0 : index
    %23 = vector.load %arg7[%c0_8, %c0_9] : memref<1x32xf32, #tpu.memory_space<vmem>>, vector<1x32xf32>
    %24 = vector.broadcast %23 : vector<1x32xf32> to vector<16x32xf32>
    %25 = arith.addf %22, %24 : vector<16x32xf32>
    %c0_10 = arith.constant 0 : index
    %c0_11 = arith.constant 0 : index
    %26 = vector.load %arg9[%c0_10, %c0_11] : memref<16x96xf32, #tpu.memory_space<vmem>>, vector<16x96xf32>
    %c0_12 = arith.constant 0 : index
    %c0_13 = arith.constant 0 : index
    %27 = vector.load %arg4[%c0_12, %c0_13] : memref<32x96xf32, #tpu.memory_space<vmem>>, vector<32x96xf32>
    %cst_14 = arith.constant dense<0.000000e+00> : vector<16x96xf32>
    %28 = tpu.matmul %25, %27, %cst_14 {dimension_numbers = #tpu.dot_dimension_numbers<[1], [0], [0], [1], [0, 0, 1, 1], [], []>} : vector<16x32xf32>, vector<32x96xf32>, vector<16x96xf32> -> vector<16x96xf32>
    %29 = arith.addf %26, %28 : vector<16x96xf32>
    %c0_15 = arith.constant 0 : index
    %c0_16 = arith.constant 0 : index
    %30 = vector.load %arg9[%c0_15, %c0_16] : memref<16x96xf32, #tpu.memory_space<vmem>>, vector<16x96xf32>
    tpu.vector_store %arg9[%c0_15, %c0_16], %29 {strides = array<i32>} : memref<16x96xf32, #tpu.memory_space<vmem>>, vector<16x96xf32>,
    %c0_i32_17 = arith.constant 0 : i32
    %31 = arith.cmpi eq, %arg2, %c0_i32_17 : i32
    %32 = arith.extui %31 : i1 to i32
    %c0_i32_18 = arith.constant 0 : i32
    %33 = arith.cmpi ne, %32, %c0_i32_18 : i32
    scf.if %33 {
      %c0_19 = arith.constant 0 : index
      %c0_20 = arith.constant 0 : index
      %34 = vector.load %arg9[%c0_19, %c0_20] : memref<16x96xf32, #tpu.memory_space<vmem>>, vector<16x96xf32>
      %c0_21 = arith.constant 0 : index
      %c0_22 = arith.constant 0 : index
      %35 = vector.load %arg5[%c0_21, %c0_22] : memref<1x96xf32, #tpu.memory_space<vmem>>, vector<1x96xf32>
      %36 = vector.broadcast %35 : vector<1x96xf32> to vector<16x96xf32>
      %37 = arith.addf %34, %36 : vector<16x96xf32>
      %c0_23 = arith.constant 0 : index
      %c0_24 = arith.constant 0 : index
      %38 = vector.load %arg8[%c0_23, %c0_24] : memref<16x96xf32, #tpu.memory_space<vmem>>, vector<16x96xf32>
      tpu.vector_store %arg8[%c0_23, %c0_24], %37 {strides = array<i32>} : memref<16x96xf32, #tpu.memory_space<vmem>>, vector<16x96xf32>,
    } else {
    }
    return
  }
  func.func @transform_0(%arg0: i32, %arg1: i32, %arg2: i32) -> (i32, i32) {
    %c0_i32 = arith.constant 0 : i32
    return %arg0, %arg2 : i32, i32
  }
  func.func @transform_1(%arg0: i32, %arg1: i32, %arg2: i32) -> (i32, i32) {
    %c0_i32 = arith.constant 0 : i32
    return %arg2, %arg1 : i32, i32
  }
  func.func @transform_2(%arg0: i32, %arg1: i32, %arg2: i32) -> (i32, i32) {
    %c0_i32 = arith.constant 0 : i32
    %c0_i32_0 = arith.constant 0 : i32
    return %c0_i32, %arg1 : i32, i32
  }
  func.func @transform_3(%arg0: i32, %arg1: i32, %arg2: i32) -> (i32, i32) {
    %c0_i32 = arith.constant 0 : i32
    %c0_i32_0 = arith.constant 0 : i32
    %c0_i32_1 = arith.constant 0 : i32
    return %c0_i32, %c0_i32_0 : i32, i32
  }
  func.func @transform_4(%arg0: i32, %arg1: i32, %arg2: i32) -> (i32, i32) {
    %c0_i32 = arith.constant 0 : i32
    %c0_i32_0 = arith.constant 0 : i32
    %c0_i32_1 = arith.constant 0 : i32
    return %c0_i32, %c0_i32_0 : i32, i32
  }
  func.func @transform_5(%arg0: i32, %arg1: i32, %arg2: i32) -> (i32, i32) {
    %c0_i32 = arith.constant 0 : i32
    return %arg0, %arg1 : i32, i32
  }
}

</mosaic_0001>

<bundles_post_ra>
// kernel: tpu_custom_call.1
= control target key start
LH: loop header
LB: loop body
LE: loop exit
PB: predicated region body
PF: predicated region fallthrough
CT: control target
= control target key end

     0   :  { %10 = vsyncpa [#allocation4], 0  ;;  %s403_s0 = inlined_call_operand.hbm [shape: f32[16,32], index: 0, kind: input, shape index: {}]   ;;  %s404_s1 = inlined_call_operand.hbm [shape: f32[32,96], index: 1, kind: input, shape index: {}]   ;;  %s405_s2 = inlined_call_operand.vmem [shape: f32[1,96], index: 2, kind: input, shape index: {}]   ;;  %s406_s3 = inlined_call_operand.vmem [shape: f32[1,32], index: 3, kind: input, shape index: {}]   ;;  %s407_s4 = inlined_call_operand.vmem [shape: f32[1,32], index: 4, kind: input, shape index: {}]   ;;  %s408_s5 = inlined_call_operand.hbm [shape: f32[16,96], index: 5, kind: output, shape index: {}]  }
   0x1   :  { %11 = vsyncpa [#allocation7], 0 }
   0x2   :  { %12 = vsyncpa [#allocation5], 0  ;;  %s328_s18 = smov [#allocation3]  }
   0x3   :  { %s18_s19 = sshll.u32 %s328_s18, 4  ;;  %s19_s19 = int_to_ptr.vmem [resolvable:$true] %s18_s19 }
   0x4   :  { %s270_s20 = scalar_lea.vmem %s19_s19, 256  ;;  %p275_p1 = scmp.lt.s32.totalorder %s19_s19, %s19_s19 }
   0x5   :  { %p271_p0 = scmp.ne.s32.totalorder %s19_s19, %s270_s20  ;;  %p276_p2 = scmp.lt.s32.totalorder %s270_s20, %s270_s20 }
   0x7   :  { %p277_p3 = por %p276_p2, %p275_p1 }
   0x9   :  { %p278_p4 = pnand %p277_p3, %p271_p0 }
   0xb   :  { %281 = shalt.err (!%p278_p4)
}
   0xc   :  { %s329_s21 = smov 128   ;;  %s330_s22 = smov 8  }
   0xd   :  { %24 = dma.hbm_to_vmem [thread:$0]  %s403_s0, 256, %s19_s19, [#allocation4], %s329_s21, %s329_s21, %s330_s22  }
   0xe   :  { %s331_s25 = smov [#allocation6]  }
   0xf   :  { %s30_s26 = sshll.u32 %s331_s25, 4  ;;  %s31_s26 = int_to_ptr.vmem [resolvable:$true] %s30_s26 }
  0x10   :  { %s290_s27 = scalar_lea.vmem %s31_s26, 512  ;;  %p295_p6 = scmp.lt.s32.totalorder %s31_s26, %s31_s26 }
  0x11   :  { %p291_p5 = scmp.ne.s32.totalorder %s31_s26, %s290_s27  ;;  %p296_p7 = scmp.lt.s32.totalorder %s290_s27, %s290_s27 }
  0x13   :  { %p297_p8 = por %p296_p7, %p295_p6 }
  0x15   :  { %p298_p9 = pnand %p297_p8, %p291_p5 }
  0x17   :  { %301 = shalt.err (!%p298_p9)
}
  0x18   :  { %36 = dma.hbm_to_vmem [thread:$0]  %s404_s1, 512, %s31_s26, [#allocation7], %s329_s21, %s329_s21, %s330_s22  }
  0x19   :  { %322 = dma.done.wait [#allocation4], 256  }
  0x1a   :  { %323 = vsyncadd [#allocation4], 4294967040 }
  0x1b   :  { %324 = dma.done.wait [#allocation7], 512  }
  0x1c   :  { %325 = vsyncadd [#allocation7], 4294966784  ;;  %vm58_vm0 = vcmask 261120   ;;  %v56_v0 = vld [vmem:[#allocation3] sm:$0xff]  ;;  %v57_v1 = vld [vmem:[#allocation3 + $0x8] sm:$0xff]  ;;  %vm53_vm1 = vcmask 785408  }
  0x1d   :  { %v59_v2 = vsel %vm58_vm0, %v56_v0, 0.0  ;;  %v62_v3 = vsel %vm58_vm0, %v57_v1, 0.0  ;;  %v109_v14 = vld [vmem:[#allocation6 + $0x18] sm:$0xff]  ;;  %v108_v15 = vld [vmem:[#allocation6 + $0x10] sm:$0xff]  ;;  %v107_v16 = vld [vmem:[#allocation6 + $0x8] sm:$0xff]  ;;  %v332_v18 = vmov 0.0  }
  0x1e   :  { %60 = vadd.xlane.f32.xlu0 %v59_v2  ;;  %241 = vmatprep.subr.mxu0 %v109_v14  ;;  %v106_v17 = vld [vmem:[#allocation6] sm:$0xff]  ;;  %55 = vst.msk [vmem:[#allocation2 + $0x8] sm:$0xff] %vm53_vm1, %v332_v18  ;;  %54 = vst.msk [vmem:[#allocation2] sm:$0xff] %vm53_vm1, %v332_v18  ;;  %s333_s7 = smov [#allocation8]  }
  0x1f   :  { %242 = vmatpush3.msra.mxu0 %v109_v14  ;;  %v230_v26 = vld [vmem:[%s406_s3] ss:$0 sm:$0xff]  ;;  %s217_s8 = sshll.u32 %s333_s7, 4  ;;  %s218_s8 = int_to_ptr.vmem [resolvable:$true] %s217_s8 }
  0x20   :  { %243 = vmatprep.subr.mxu0 %v108_v15  ;;  %v231_v28 = vld [vmem:[%s407_s4] ss:$0 sm:$0xff]  ;;  %s302_s9 = scalar_lea.vmem %s218_s8, 256  ;;  %p307_p11 = scmp.lt.s32.totalorder %s218_s8, %s218_s8 }
  0x21   :  { %244 = vmatpush3.msra.mxu0 %v108_v15  ;;  %v234_v41 = vld [vmem:[%s405_s2] ss:$0 sm:$0xff]  ;;  %p303_p10 = scmp.ne.s32.totalorder %s218_s8, %s302_s9  ;;  %p308_p12 = scmp.lt.s32.totalorder %s302_s9, %s302_s9 }
  0x22   :  { %63 = vadd.xlane.f32.xlu0 %v62_v3  ;;  %245 = vmatprep.subr.mxu0 %v107_v16 }
  0x23   :  { %246 = vmatpush3.msra.mxu0 %v107_v16  ;;  %p309_p13 = por %p308_p12, %p307_p11 }
  0x24   :  { %247 = vmatprep.subr.mxu0 %v106_v17 }
  0x25   :  { %248 = vmatpush3.msra.mxu0 %v106_v17  ;;  %v105_v35 = vld [vmem:[#allocation2 + $0x8] sm:$0xff]  ;;  %v104_v37 = vld [vmem:[#allocation2] sm:$0xff]  ;;  %p310_p0 = pnand %p309_p13, %p303_p10 }
  0xa7   :  { %v61_v4 = vpop.xlane.xlu0 %60 }
  0xa8   :  { %v66_v5 = vmul.f32 0.03125, %v61_v4 }
  0xaa   :  { %v68_v6 = vsub.f32 %v56_v0, %v66_v5 }
  0xab   :  { %v64_v7 = vpop.xlane.xlu0 %63 }
  0xac   :  { %v67_v8 = vmul.f32 0.03125, %v64_v7  ;;  %v70_v9 = vmul.f32 %v68_v6, %v68_v6 }
  0xae   :  { %v69_v10 = vsub.f32 %v57_v1, %v67_v8  ;;  %v72_v11 = vsel %vm58_vm0, %v70_v9, 0.0 }
  0xaf   :  { %73 = vadd.xlane.f32.xlu1 %v72_v11 }
  0xb0   :  { %v71_v12 = vmul.f32 %v69_v10, %v69_v10 }
  0xb2   :  { %v75_v13 = vsel %vm58_vm0, %v71_v12, 0.0 }
  0xb3   :  { %76 = vadd.xlane.f32.xlu1 %v75_v13 }
 0x138   :  { %v74_v19 = vpop.xlane.xlu1 %73 }
 0x139   :  { %v78_v20 = vmul.f32 0.03125, %v74_v19 }
 0x13b   :  { %v80_v21 = vadd.f32 1e-05, %v78_v20 }
 0x13c   :  { %v77_v22 = vpop.xlane.xlu1 %76 }
 0x13d   :  { %258 = vrsqrt.f32 %v80_v21  ;;  %v79_v23 = vmul.f32 0.03125, %v77_v22 }
 0x13f   :  { %v81_v24 = vadd.f32 1e-05, %v79_v23 }
 0x141   :  { %260 = vrsqrt.f32 %v81_v24 }
 0x14a   :  { %v259_v25 = vpop.eup %258 }
 0x14b   :  { %v84_v27 = vmul.f32 %v259_v25, %v68_v6 }
 0x14d   :  { %v93_v29 = vmul.f32 %v230_v26, %v84_v27 }
 0x14e   :  { %v261_v30 = vpop.eup %260 }
 0x14f   :  { %v85_v31 = vmul.f32 %v261_v30, %v69_v10  ;;  %v102_v32 = vadd.f32 %v231_v28, %v93_v29 }
 0x151   :  { %v94_v33 = vmul.f32 %v230_v26, %v85_v31  ;;  %249 = vmatprep.mubr.msk.f32.mxu0 %vm58_vm0, %v102_v32 }
 0x153   :  { %v103_v34 = vadd.f32 %v231_v28, %v94_v33 }
 0x155   :  { %250 = vmatmul.mubr.msk.f32.vlgmr.msra.gmra.mxu0 %vm58_vm0, %v103_v34 }
 0x215   :  { %v251_v36 = vpop.f32.mrf.mxu0 }
 0x216   :  { %v192_v38 = vadd.f32 %v251_v36, %v105_v35 }
 0x217   :  { %v182_v39 = vpop.f32.mrf.mxu0 }
 0x218   :  { %195 = vst.msk [vmem:[#allocation2 + $0x8] sm:$0xff] %vm53_vm1, %v192_v38  ;;  %v191_v40 = vadd.f32 %v182_v39, %v104_v37 }
 0x21a   :  { %194 = vst.msk [vmem:[#allocation2] sm:$0xff] %vm53_vm1, %v191_v40 }
 0x21f   :  { %v200_v42 = vld [vmem:[#allocation2 + $0x8] sm:$0xff] }
 0x220   :  { %v209_v43 = vadd.f32 %v234_v41, %v200_v42 }
 0x221   :  { %v199_v44 = vld [vmem:[#allocation2] sm:$0xff] }
 0x222   :  { %v208_v45 = vadd.f32 %v234_v41, %v199_v44  ;;  %211 = vst.msk [vmem:[#allocation8 + $0x8] sm:$0xff] %vm53_vm1, %v209_v43 }
 0x224   :  { %210 = vst.msk [vmem:[#allocation8] sm:$0xff] %vm53_vm1, %v208_v45 }
 0x225   :  { %313 = shalt.err (!%p310_p0)
}
 0x226   :  { %223 = dma.vmem_to_hbm [thread:$0]  %s218_s8, 256, %s408_s5, [#allocation5], %s329_s21, %s329_s21, %s330_s22  }
 0x227   :  { %326 = dma.done.wait [#allocation5], 256  }
 0x228   :  { %327 = vsyncadd [#allocation5], 4294967040 }
 0x229   :  { %227 = vsyncpa [#allocation4], 1 }
 0x22a   :  { %228 = vsyncpa [#allocation7], 1 }
 0x22b   :  { %229 = vsyncpa [#allocation5], 1 }

</bundles_post_ra>
